<compile_context>
chip_gen: v7x
topology: tpu7x:2x2x1
jax: 0.10.0
libtpu: 0.0.40
codegen_flags: <defaults>
</compile_context>

<pallas_src>
import jax
import jax.numpy as jnp
from jax.experimental import pallas as pl
from jax.experimental.pallas import tpu as pltpu

_LANES = 128
_SUBLANES = 8
_MAX_BLOCK_ROWS = 4096          # 4096 * 128 * 4B = 2 MiB per f32 block buffer
_SMALL_N_THRESHOLD = 16384      # below this, fused XLA beats any kernel launch


def _round_up(a: int, m: int) -> int:
    return ((a + m - 1) // m) * m


def _linear_kernel(w_ref, b_ref, x_ref, o_ref):
    # w_ref/b_ref: (1,) float32 scalars in SMEM (scalar path, no DMA tiles);
    # x_ref/o_ref: lane-dense (block_rows, 128) VMEM tiles.  Pure VPU FMA in
    # f32, cast on store (no-op for f32 inputs).
    w = w_ref[0]
    b = b_ref[0]
    o_ref[...] = (x_ref[...].astype(jnp.float32) * w + b).astype(o_ref.dtype)


def linear_forward(x: jax.Array, w: jax.Array, b: jax.Array,
                   *, min_pallas_elems: int = _SMALL_N_THRESHOLD) -> jax.Array:
    """x: (N, 1), w: (1, 1) (PyTorch [out_features, in_features]), b: (1,).
    Returns (N, 1) = x @ w.T + b."""
    n = x.shape[0]
    out_dtype = x.dtype
    w00 = w[0, 0].astype(jnp.float32)
    b0 = b[0].astype(jnp.float32)

    # Small-N dispatch: a single fused XLA elementwise op is strictly cheaper
    # than the pallas_call launch for tiny problems (e.g. the spec's N=100).
    if n < min_pallas_elems:
        return (x.astype(jnp.float32) * w00 + b0).astype(out_dtype)

    xf = x.reshape(-1)                       # (N,) metadata-only reshape

    # Lane-dense tiling of the 128-aligned body.
    rows_total = n // _LANES
    block_rows = min(_MAX_BLOCK_ROWS, _round_up(max(rows_total, 1), _SUBLANES))
    # Prefer >= 2 grid steps when there is enough work so both v7x TensorCores
    # get HBM traffic; costs ~0.35 us extra on single-TC v5e/v6e.
    if rows_total >= 2 * _SUBLANES and rows_total // block_rows < 2:
        block_rows = _round_up(pl.cdiv(rows_total, 2), _SUBLANES)
    n_blocks = rows_total // block_rows      # whole blocks -> Pallas
    rows_body = n_blocks * block_rows
    n_body = rows_body * _LANES              # exact multiple of the block size

    parts = []
    if n_body > 0:
        x_body = xf[:n_body].reshape(rows_body, _LANES)   # lane-dense view
        w_smem = w.reshape(1).astype(jnp.float32)
        b_smem = b.reshape(1).astype(jnp.float32)
        y_body = pl.pallas_call(
            _linear_kernel,
            out_shape=jax.ShapeDtypeStruct((rows_body, _LANES), out_dtype),
            grid=(n_blocks,),
            in_specs=[
                pl.BlockSpec(memory_space=pltpu.MemorySpace.SMEM),   # w scalar
                pl.BlockSpec(memory_space=pltpu.MemorySpace.SMEM),   # b scalar
                pl.BlockSpec((block_rows, _LANES), lambda i: (i, 0)),
            ],
            out_specs=pl.BlockSpec((block_rows, _LANES), lambda i: (i, 0)),
            compiler_params=pltpu.CompilerParams(
                dimension_semantics=("parallel",),
            ),
        )(w_smem, b_smem, x_body)
        parts.append(y_body.reshape(-1))

    if n_body < n:
        # Ragged remainder (< one block): tiny fused XLA FMA, no padding of
        # the whole array and no whole-array output slice.
        tail = xf[n_body:]
        parts.append((tail.astype(jnp.float32) * w00 + b0).astype(out_dtype))

    y = parts[0] if len(parts) == 1 else jnp.concatenate(parts)
    return y.reshape(n, 1)


if __name__ == "__main__":
    # Deterministic parameter init (nn.Linear(1, 1): U(-1, 1) since fan_in=1).
    key = jax.random.PRNGKey(0)
    kw, kb = jax.random.split(key)
    w = jax.random.uniform(kw, (1, 1), jnp.float32, minval=-1.0, maxval=1.0)
    b = jax.random.uniform(kb, (1,), jnp.float32, minval=-1.0, maxval=1.0)

    def ref(xv):
        return xv @ w.T + b

    # 1) Spec-shaped input: torch.arange(0, 1, 0.01).unsqueeze(1) -> (100, 1).
    #    Takes the small-N fused-XLA dispatch path.
    x_spec = jnp.arange(0.0, 1.0, 0.01, dtype=jnp.float32).reshape(-1, 1)
    y_spec = jax.block_until_ready(linear_forward(x_spec, w, b))
    assert y_spec.shape == (100, 1)
    assert jnp.allclose(y_spec, ref(x_spec), atol=1e-6), "mismatch (small-N path)"

    # 2) Force the Pallas path on a small lane-aligned input (4096 = 32 rows
    #    of 128 lanes) to exercise the kernel + multi-step grid.
    x_kern = jnp.linspace(-1.0, 1.0, 4096, dtype=jnp.float32).reshape(-1, 1)
    y_kern = jax.block_until_ready(linear_forward(x_kern, w, b, min_pallas_elems=0))
    assert y_kern.shape == (4096, 1)
    assert jnp.allclose(y_kern, ref(x_kern), atol=1e-6), "mismatch (pallas path)"

    # 3) Ragged N: 128-aligned body via Pallas, 37-element tail via fused XLA.
    x_rag = jnp.linspace(0.0, 2.0, 4096 + 37, dtype=jnp.float32).reshape(-1, 1)
    y_rag = jax.block_until_ready(linear_forward(x_rag, w, b, min_pallas_elems=0))
    assert y_rag.shape == (4096 + 37, 1)
    assert jnp.allclose(y_rag, ref(x_rag), atol=1e-6), "mismatch (ragged path)"

    print("KERNEL_OK")
</pallas_src>

<mosaic_0001>
module attributes {stable_mosaic.version = 11 : i64} {
  func.func @_linear_kernel(%arg0: i32, %arg1: memref<1xf32, #tpu.memory_space<smem>>, %arg2: memref<1xf32, #tpu.memory_space<smem>>, %arg3: memref<16x128xf32, #tpu.memory_space<vmem>>, %arg4: memref<16x128xf32, #tpu.memory_space<vmem>>) attributes {dimension_semantics = [#tpu.dimension_semantics<parallel>], iteration_bounds = array<i64: 2>, scalar_prefetch = 0 : i64, scratch_operands = 0 : i64, tpu.core_type = #tpu.core_type<tc>, window_params = [{transform_indices = @transform_0, window_bounds = array<i64: 1>}, {transform_indices = @transform_1, window_bounds = array<i64: 1>}, {transform_indices = @transform_2, window_bounds = array<i64: 16, 128>}, {transform_indices = @transform_3, window_bounds = array<i64: 16, 128>}]} {
    %c0 = arith.constant 0 : index
    %0 = memref.load %arg1[%c0] : memref<1xf32, #tpu.memory_space<smem>>
    %c0_0 = arith.constant 0 : index
    %1 = memref.load %arg2[%c0_0] : memref<1xf32, #tpu.memory_space<smem>>
    %c0_1 = arith.constant 0 : index
    %c0_2 = arith.constant 0 : index
    %2 = vector.load %arg3[%c0_1, %c0_2] : memref<16x128xf32, #tpu.memory_space<vmem>>, vector<16x128xf32>
    %3 = vector.broadcast %0 : f32 to vector<16x128xf32>
    %4 = arith.mulf %2, %3 : vector<16x128xf32>
    %5 = vector.broadcast %1 : f32 to vector<16x128xf32>
    %6 = arith.addf %4, %5 : vector<16x128xf32>
    %c0_3 = arith.constant 0 : index
    %c0_4 = arith.constant 0 : index
    %7 = vector.load %arg4[%c0_3, %c0_4] : memref<16x128xf32, #tpu.memory_space<vmem>>, vector<16x128xf32>
    tpu.vector_store %arg4[%c0_3, %c0_4], %6 {strides = array<i32>} : memref<16x128xf32, #tpu.memory_space<vmem>>, vector<16x128xf32>,
    return
  }
  func.func @transform_0(%arg0: i32) -> i32 {
    %c0_i32 = arith.constant 0 : i32
    %c0_i32_0 = arith.constant 0 : i32
    return %c0_i32 : i32
  }
  func.func @transform_1(%arg0: i32) -> i32 {
    %c0_i32 = arith.constant 0 : i32
    %c0_i32_0 = arith.constant 0 : i32
    return %c0_i32 : i32
  }
  func.func @transform_2(%arg0: i32) -> (i32, i32) {
    %c0_i32 = arith.constant 0 : i32
    %c0_i32_0 = arith.constant 0 : i32
    return %arg0, %c0_i32 : i32, i32
  }
  func.func @transform_3(%arg0: i32) -> (i32, i32) {
    %c0_i32 = arith.constant 0 : i32
    %c0_i32_0 = arith.constant 0 : i32
    return %arg0, %c0_i32 : i32, i32
  }
}

</mosaic_0001>

<bundles_post_ra>
// kernel: tpu_custom_call.1
= control target key start
LH: loop header
LB: loop body
LE: loop exit
PB: predicated region body
PF: predicated region fallthrough
CT: control target
= control target key end

     0   :  { %s650_s0 = inlined_call_operand.<no memory space> [shape: f32[1], index: 0, kind: input, shape index: {}]   ;;  %s651_s1 = inlined_call_operand.<no memory space> [shape: f32[1], index: 1, kind: input, shape index: {}]   ;;  %s652_s2 = inlined_call_operand.hbm [shape: f32[32,128], index: 2, kind: input, shape index: {}]   ;;  %s653_s3 = inlined_call_operand.hbm [shape: f32[32,128], index: 3, kind: output, shape index: {}]  }
   0x1   :  { %8 = sst [smem:[#allocation2]] %s650_s0 }
   0x2   :  { %9 = sst [smem:[#allocation3]] %s651_s1 }
   0x3   :  { %10 = vsyncpa [#allocation5], 0 }
   0x4   :  { %12 = vsyncpa [#allocation5 + $0x1], 0 }
   0x5   :  { %13 = vsyncpa [#allocation6], 0 }
   0x6   :  { %15 = vsyncpa [#allocation6 + $0x1], 0  ;;  %s488_s16 = smov 0   ;;  %s490_s17 = smov 0  }
   0x7   :  { %s492_s18 = smov 0   ;;  %s494_s19 = smov 0  }
   0x8 LB: > { %s509_s0 = sadd.s32 4294967295, %s454_s19   ;;  %s292_s1 = sadd.s32 4294967294, %s454_s19   ;;  %s454_s19 = sphi %s494_s19, %s666_s19   ;;  %s450_s18 = sphi %s492_s18, %s665_s18   ;;  %s446_s17 = sphi %s490_s17, %s664_s17   ;;  %s442_s16 = sphi %s488_s16, %s663_s16  }
   0x9   : > { %s513_s20 = sadd.s32 1, %s454_s19   ;;  %s70_s21 = sadd.s32 1, %s450_s18 }
   0xa   : > { %s67_s22 = ssub.s32 %s454_s19, %s513_s20  ;;  %p77_p0 = scmp.ne.s32.totalorder %s450_s18, %s446_s17 }
   0xb   : > { %p68_p1 = scmp.eq.s32.totalorder %s67_s22, 0  ;;  %p78_p2 = scmp.eq.s32.totalorder %s454_s19, 0 }
   0xc   : > { %p83_p3 = scmp.ne.s32.totalorder %s446_s17, %s442_s16  ;;  %p84_p4 = scmp.eq.s32.totalorder %s509_s0, 0 }
   0xd   : > { %s525_s23 = scalar_select %p68_p1, %s450_s18, %s70_s21  }
   0xe   : > { %p527_p5 = por %p78_p2, %p77_p0  ;;  %p531_p6 = por %p84_p4, %p83_p3 }
   0xf   : > { %p107_p7 = scmp.eq.s32.totalorder %s509_s0, 1  ;;  %p113_p8 = scmp.eq.s32.totalorder %s292_s1, 1 }
  0x10   : > { %p320_p10 = scmp.lt.s32.totalorder %s454_s19, 2  ;;  %s139_s28 = sand.u32 1, %s450_s18  }
  0x11   : > { %p538_p11 = por %p107_p7, %p77_p0  ;;  %p542_p12 = por %p113_p8, %p83_p3 }
  0x12   : > { %s306_s29 = sshll.u32 %s454_s19, 8  ;;  %s295_s30 = sshll.u32 %s139_s28, 4 }
  0x13   : > { %s657_s26 = scalar_select %p538_p11, 1, 0 }
  0x14   : > { %s658_s27 = scalar_select %p542_p12, 1, 0 }
  0x15   : > { %s551_s6 = scalar_lea.hbm %s652_s2, %s306_s29  ;;  %s143_s7 = scalar_lea.vmem [#allocation4], %s295_s30 }
  0x16   : > { %s150_s8 = sshll.u32 %s143_s7, 4  ;;  %p555_p13 = pnand %p320_p10, %p527_p5  ;;  %s559_s8 = int_to_ptr.vmem [resolvable:$true] %s150_s8 }
  0x17   : > { %s561_s10 = scalar_lea.sflag [#allocation5], %s139_s28  ;;  %s358_s11 = scalar_lea.hbm %s551_s6, 256 }
  0x18   : > { %p359_p0 = scmp.ne.s32.totalorder %s551_s6, %s358_s11  ;;  %p360_p1 = pneg %p555_p13 }
  0x19   : > { %s363_s14 = scalar_lea.hbm %s652_s2, 512  ;;  %p364_p4 = scmp.lt.u32.totalorder %s551_s6, %s652_s2 }
  0x1a   : > { %p361_p2 = pnand %p360_p1, %p359_p0  ;;  %p365_p5 = scmp.lt.u32.totalorder %s363_s14, %s358_s11 }
  0x1b   : > { %p367_p8 = scmp.lt.u32.totalorder %s358_s11, %s551_s6 }
  0x1c   : > { %p362_p3 = pneg %p361_p2  ;;  %p366_p7 = por %p365_p5, %p364_p4 }
  0x1e   : > { %p368_p10 = por %p367_p8, %p366_p7 }
  0x20   : > { %p369_p9 = pnand %p368_p10, %p362_p3 }
  0x22   : > { %372 = shalt.err (!%p369_p9)
}
  0x23   : > { %s373_s21 = scalar_lea.vmem %s559_s8, 256  ;;  %s456_s22 = smov [#allocation4]  }
  0x24   : > { %p374_p0 = scmp.ne.s32.totalorder %s559_s8, %s373_s21  ;;  %s378_s24 = sshll.u32 %s456_s22, 4  ;;  %s379_s24 = int_to_ptr.vmem [resolvable:$false] %s378_s24 }
  0x25   : > { %s380_s28 = scalar_lea.vmem %s379_s24, 512  ;;  %p381_p11 = scmp.lt.s32.totalorder %s559_s8, %s379_s24 }
  0x26   : > { %p376_p2 = pnand %p374_p0, %p360_p1  ;;  %p382_p4 = scmp.lt.s32.totalorder %s380_s28, %s373_s21 }
  0x28   : > { %p377_p12 = pneg %p376_p2  ;;  %p383_p5 = por %p382_p4, %p381_p11 }
  0x2a   : > { %p384_p7 = pnand %p383_p5, %p377_p12 }
  0x2c   : > { %387 = shalt.err (!%p384_p7)
}
  0x2d   : > { %s457_s29 = smov 128   ;;  %s458_s30 = smov 8  }
  0x2e   : > { %315 = dma.hbm_to_vmem [thread:$0]  (!%p555_p13), %s551_s6, 256, %s559_s8, %s561_s10, %s457_s29, %s457_s29, %s458_s30  }
  0x2f   : > { %p298_p9 = scmp.ge.s32.totalorder %s454_s19, 1  ;;  %p158_p1 = scmp.lt.s32.totalorder %s454_s19, 3 }
  0x31   : > { %p159_p3 = pnand %p298_p9, %p158_p1 }
  0x32   : > { %s592_s4 = sand.u32 (!%p159_p3), 1, %s446_s17  }
  0x33   : > { %162 = sbr.rel (%p159_p3) target bundleno = 87 (0x57), region = 32  ;;  %s299_s5 = sshll.u32 (!%p159_p3), %s592_s4, 4 }
  0x34   : > { %s165_s7 = scalar_lea.sflag (!%p159_p3), [#allocation5], %s592_s4  ;;  %s168_s11 = scalar_lea.vmem (!%p159_p3), [#allocation4], %s299_s5 }
  0x3a   : > { %433 = dma.done.wait (%p531_p6), %s165_s7, 256  }
  0x3b   : > { %435 = vsyncadd (%p531_p6), %s165_s7, 4294967040  ;;  %s193_s6 = sld [smem:[#allocation2]]  ;;  %s190_s9 = scalar_lea.vmem [#allocation7], %s299_s5  ;;  %v195_v0 = vld [vmem:[%s168_s11] sm:$0xff]  ;;  %v196_v3 = vld [vmem:[%s168_s11 + $0x8] sm:$0xff] }
  0x3c   : > { %s194_s8 = sld [smem:[#allocation3]]  ;;  %s219_s10 = sshll.u32 %s190_s9, 4  ;;  %s601_s10 = int_to_ptr.vmem [resolvable:$true] %s219_s10 }
  0x3d   : > { %s307_s12 = sshll.u32 %s509_s0, 8  ;;  %s206_s0 = scalar_lea.sflag [#allocation6], %s592_s4 }
  0x3e   : > { %s606_s25 = scalar_lea.hbm %s653_s3, %s307_s12  ;;  %s388_s15 = scalar_lea.vmem %s601_s10, 256 }
  0x3f   : > { %p389_p6 = scmp.ne.s32.totalorder %s601_s10, %s388_s15  ;;  %p660_p11 = scmp.ne.s32.totalorder %s657_s26, 0 }
  0x40   : > { %s459_s1 = smov [#allocation7]  }
  0x41   : > { %v197_v1 = vstv %s193_s6  ;;  %p390_p12 = pnand %p389_p6, %p660_p11  ;;  %s392_s21 = sshll.u32 %s459_s1, 4  ;;  %s393_s21 = int_to_ptr.vmem [resolvable:$false] %s392_s21 }
  0x42   : > { %v200_v2 = vstv %s194_s8  ;;  %v198_v4 = vmul.f32 %v197_v1, %v195_v0  ;;  %v199_v5 = vmul.f32 %v197_v1, %v196_v3  ;;  %s394_s22 = scalar_lea.vmem %s393_s21, 512  ;;  %p395_p8 = scmp.lt.s32.totalorder %s601_s10, %s393_s21 }
  0x43   : > { %p391_p13 = pneg %p390_p12  ;;  %p396_p10 = scmp.lt.s32.totalorder %s394_s22, %s388_s15 }
  0x44   : > { %v201_v6 = vadd.f32 %v200_v2, %v198_v4  ;;  %v202_v7 = vadd.f32 %v200_v2, %v199_v5 }
  0x45   : > { %p397_p0 = por %p396_p10, %p395_p8 }
  0x46   : > { %203 = vst [vmem:[%s190_s9] sm:$0xff] %v201_v6  ;;  %204 = vst [vmem:[%s190_s9 + $0x8] sm:$0xff] %v202_v7 }
  0x47   : > { %p398_p2 = pnand %p397_p0, %p391_p13 }
  0x49   : > { %401 = shalt.err (!%p398_p2)
}
  0x4a   : > { %s402_s24 = scalar_lea.hbm %s606_s25, 256  ;;  %s406_s30 = scalar_lea.hbm %s653_s3, 512 }
  0x4b   : > { %p403_p4 = scmp.ne.s32.totalorder %s606_s25, %s402_s24  ;;  %p407_p9 = scmp.lt.u32.totalorder %s606_s25, %s653_s3 }
  0x4c   : > { %p408_p1 = scmp.lt.u32.totalorder %s406_s30, %s402_s24  ;;  %p410_p6 = scmp.lt.u32.totalorder %s402_s24, %s606_s25 }
  0x4d   : > { %p404_p5 = pnand %p403_p4, %p660_p11 }
  0x4e   : > { %p409_p3 = por %p408_p1, %p407_p9 }
  0x4f   : > { %p405_p7 = pneg %p404_p5 }
  0x50   : > { %p411_p12 = por %p410_p6, %p409_p3 }
  0x52   : > { %p412_p13 = pnand %p411_p12, %p405_p7 }
  0x54   : > { %415 = shalt.err (!%p412_p13)
}
  0x55   : > { %s460_s11 = smov 128   ;;  %s461_s6 = smov 8  }
  0x56   : > { %310 = dma.vmem_to_hbm [thread:$0]  (%p660_p11), %s601_s10, 256, %s606_s25, %s206_s0, %s460_s11, %s460_s11, %s461_s6  }
  0x57 PF: > { %s234_s8 = sand.u32 1, %s442_s16   ;;  %p661_p8 = scmp.ne.s32.totalorder %s658_s27, 0 }
  0x58   : > { %p662_p10 = scmp.ge.s32.totalorder %s454_s19, 2  ;;  %s235_s9 = scalar_lea.sflag [#allocation6], %s234_s8 }
  0x5a   : > { %p317_p0 = pnand %p662_p10, %p661_p8 }
  0x5c   : > { %437 = dma.done.wait (!%p317_p0), %s235_s9, 256  }
  0x5d   : > { %439 = vsyncadd (!%p317_p0), %s235_s9, 4294967040  ;;  %p18_p2 = scmp.ge.s32.totalorder %s513_s20, 4   ;;  %s663_s16 = smov %s446_s17 }
  0x5e   : > { %s664_s17 = smov %s450_s18  ;;  %s665_s18 = smov %s525_s23 }
  0x5f   : > { %s666_s19 = smov %s513_s20  ;;  %20 = sbr.rel (!%p18_p2) target bundleno = 8 (0x8), region = 77 }
  0x66   :  { %240 = vsyncpa [#allocation5], 1 }
  0x67   :  { %242 = vsyncpa [#allocation5 + $0x1], 1 }
  0x68   :  { %243 = vsyncpa [#allocation6], 1 }
  0x69   :  { %245 = vsyncpa [#allocation6 + $0x1], 1 }

</bundles_post_ra>
